<compile_context>
chip_gen: v7x
topology: tpu7x:2x2x1
jax: 0.10.0
libtpu: 0.0.40
codegen_flags: <defaults>
</compile_context>

<pallas_src>
import functools

import jax
import jax.numpy as jnp
from jax.experimental import pallas as pl
from jax.experimental.pallas import tpu as pltpu


# --------------------------------------------------------------------------
# Kernel 1: FiLM parameters (scale = 1 + gamma, shift = beta) for ALL batches
# in a single grid step.
# --------------------------------------------------------------------------
def _film_params_kernel(bstack_ref, ws_ref, bs_ref, wgb_ref, bgb_ref, gb_ref, *, L):
    R = bstack_ref.shape[0]                                  # R = B * L
    bstack = bstack_ref[...].astype(jnp.float32)             # (R, 6) pre-stacked taps
    h = jnp.dot(bstack, ws_ref[...],
                preferred_element_type=jnp.float32) + bs_ref[...]   # mlp_shared
    actv = h * jax.nn.sigmoid(h)                             # SiLU (EUP)

    # per-batch shifted taps via a whole-array roll + (row % L) boundary mask
    rows = jax.lax.broadcasted_iota(jnp.int32, (R, 1), 0)
    pos = rows % L
    a_prev = jnp.where(pos == 0, 0.0, pltpu.roll(actv, shift=1, axis=0))       # actv[l-1]
    a_next = jnp.where(pos == L - 1, 0.0, pltpu.roll(actv, shift=R - 1, axis=0))  # actv[l+1]

    # fused gamma||beta conv: ONE MXU contraction with K = 3H
    cat = jnp.concatenate([a_prev, actv, a_next], axis=1)    # (R, 3H)
    gb = jnp.dot(cat, wgb_ref[...],
                 preferred_element_type=jnp.float32) + bgb_ref[...]   # (R, 2*Cout)
    gb_ref[...] = gb                                          # gamma cols already hold 1+gamma


# --------------------------------------------------------------------------
# Kernel 2: FiLM modulation  out = x * scale + shift   (scale = 1 + gamma).
#   x arrives flattened as (B*Cout*L, W); gb as (B*Cout*L, 2), lane-broadcast
#   over W.  FMA in f32, cast only on the output store.
# --------------------------------------------------------------------------
def _modulate_kernel(x_ref, gb_ref, o_ref):
    x = x_ref[...]
    gb = gb_ref[...]                                   # (T, 2) f32
    scale = gb[:, 0:1]                                 # (T, 1) -> lane-broadcast over W
    shift = gb[:, 1:2]
    o_ref[...] = (x.astype(jnp.float32) * scale + shift).astype(o_ref.dtype)


# --------------------------------------------------------------------------
# Hardware-derived VMEM budget + tile picker.
# --------------------------------------------------------------------------
def _vmem_budget_bytes():
    try:
        cap = int(pltpu.get_tpu_info().vmem_capacity_bytes)
    except Exception:
        cap = 64 * 1024 * 1024                        # assume smallest (v7x) if query fails
    # leave headroom for Mosaic internal scratch / compiler-managed buffers
    vmem_limit = max(min(3 * cap // 4, cap - 16 * 1024 * 1024), 16 * 1024 * 1024)
    tile_budget = max(vmem_limit - 8 * 1024 * 1024, 8 * 1024 * 1024)
    return tile_budget, vmem_limit


def _pick_tiles(rows, w, itemsize, tile_budget, target_bytes=4 * 1024 * 1024):
    """Row/W tile sizes for the flattened modulate pass.

    Row tile is a multiple of 8 (or the full row extent); W tile is either the
    full W or a multiple of 128 when even an 8-row full-W stripe would blow the
    double-buffered VMEM budget.  Row-step count is nudged to be even (>=2) so
    both v7x TensorCores get work."""
    def footprint(tr, tw):
        # double-buffered: x-in + x-out tiles + lane-padded (tr, 2) gamma/beta tile
        return 2 * (2 * tr * tw * itemsize + tr * 512)

    # --- W axis ---
    if footprint(8, w) <= tile_budget:
        tw = w
    else:
        tw = (tile_budget // 2 - 8 * 512) // (2 * 8 * itemsize)
        tw = max(128, (tw // 128) * 128)

    # --- row axis: biggest multiple-of-8 under both the byte target and budget ---
    tr_target = max(8, (target_bytes // (tw * itemsize)) // 8 * 8)
    tr_budget = max(8, (tile_budget // (2 * (2 * tw * itemsize + 512))) // 8 * 8)
    tr = min(tr_target, tr_budget)
    if tr >= rows:
        tr = rows                                      # single full-extent block (always legal)

    # --- keep the number of row steps even (>=2) for v7x dual-TC balance ---
    steps = -(-rows // tr)
    if steps % 2 == 1 and rows > 8:
        tr2 = max(8, ((-(-rows // (steps + 1))) + 7) // 8 * 8)
        if -(-rows // tr2) % 2 == 0:
            tr = tr2
    return tr, tw


# --------------------------------------------------------------------------
# Forward wrapper.
# --------------------------------------------------------------------------
def bsft_forward(x, band, params):
    """x: (B, Cout, L, W) native layout; band: (B, 2, L). Returns same layout as x."""
    B, Cout, L, W = x.shape
    H = params["Ws"].shape[0]
    f32 = jnp.float32
    R = B * L

    # ---- tiny wrapper-side prep: band taps + weight folding (all O(B*L) data) ----
    band_pad = jnp.pad(band.astype(f32), ((0, 0), (0, 0), (1, 1)))
    taps = jnp.stack([band_pad[:, :, 0:L],          # band[l-1]  (tap k=0)
                      band_pad[:, :, 1:L + 1],      # band[l]    (tap k=1)
                      band_pad[:, :, 2:L + 2]],     # band[l+1]  (tap k=2)
                     axis=1)                        # (B, 3, 2, L)
    band_stacked = jnp.transpose(taps, (0, 3, 1, 2)).reshape(R, 6)

    ws = jnp.transpose(params["Ws"].astype(f32), (2, 1, 0)).reshape(6, H)        # (6, H)
    bs = params["bs"].astype(f32)[None, :]                                        # (1, H)
    wgb = jnp.transpose(
        jnp.concatenate([params["Wg"], params["Wb"]], axis=0).astype(f32),
        (2, 1, 0)).reshape(3 * H, 2 * Cout)                                       # (3H, 2*Cout)
    # fold the "+1" of (1 + gamma) into the gamma bias
    bgb = jnp.concatenate([params["bg"] + 1.0, params["bb"]]).astype(f32)[None, :]  # (1, 2*Cout)

    film_cost = pl.CostEstimate(
        flops=int(2 * R * 6 * H + 2 * R * 3 * H * 2 * Cout + 5 * R * H),
        transcendentals=int(R * H),
        bytes_accessed=int(4 * (R * 6 + 6 * H + H + 3 * H * 2 * Cout
                                + 2 * Cout + R * 2 * Cout)))

    gb = pl.pallas_call(
        functools.partial(_film_params_kernel, L=L),
        out_shape=jax.ShapeDtypeStruct((R, 2 * Cout), f32),
        grid_spec=pltpu.PrefetchScalarGridSpec(
            num_scalar_prefetch=0,
            grid=(1,),
            in_specs=[
                pl.BlockSpec((R, 6), lambda i: (0, 0)),
                pl.BlockSpec((6, H), lambda i: (0, 0)),
                pl.BlockSpec((1, H), lambda i: (0, 0)),
                pl.BlockSpec((3 * H, 2 * Cout), lambda i: (0, 0)),
                pl.BlockSpec((1, 2 * Cout), lambda i: (0, 0)),
            ],
            out_specs=pl.BlockSpec((R, 2 * Cout), lambda i: (0, 0)),
        ),
        compiler_params=pltpu.CompilerParams(dimension_semantics=("arbitrary",)),
        cost_estimate=film_cost,
    )(band_stacked, ws, bs, wgb, bgb)

    # tiny reorder (O(B*L*Cout) data, ~2/W of x's bytes) into flattened-x row
    # order: row = b*Cout*L + c*L + l, cols = [1+gamma, beta]
    scale = gb[:, :Cout].reshape(B, L, Cout)
    shift = gb[:, Cout:].reshape(B, L, Cout)
    gb_flat = jnp.transpose(jnp.stack([scale, shift], axis=-1),
                            (0, 2, 1, 3)).reshape(B * Cout * L, 2)

    # x: free contiguous reshape, no HBM data movement
    rows = B * Cout * L
    x_flat = x.reshape(rows, W)
    tile_budget, vmem_limit = _vmem_budget_bytes()
    tr, tw = _pick_tiles(rows, W, x.dtype.itemsize, tile_budget)
    grid = (pl.cdiv(rows, tr), pl.cdiv(W, tw))

    mod_cost = pl.CostEstimate(
        flops=int(2 * rows * W),
        transcendentals=0,
        bytes_accessed=int(2 * rows * W * x.dtype.itemsize + rows * 2 * 4))

    out = pl.pallas_call(
        _modulate_kernel,
        out_shape=jax.ShapeDtypeStruct((rows, W), x.dtype),
        grid_spec=pltpu.PrefetchScalarGridSpec(
            num_scalar_prefetch=0,
            grid=grid,
            in_specs=[
                pl.BlockSpec((tr, tw), lambda r, w: (r, w)),
                pl.BlockSpec((tr, 2), lambda r, w: (r, 0)),
            ],
            out_specs=pl.BlockSpec((tr, tw), lambda r, w: (r, w)),
        ),
        compiler_params=pltpu.CompilerParams(
            dimension_semantics=("parallel", "parallel"),
            vmem_limit_bytes=int(vmem_limit)),
        cost_estimate=mod_cost,
    )(x_flat, gb_flat)

    # TODO(synk): further speedup requires fusing the FiLM modulation into x's
    # producer/consumer (or in-place aliasing at the call site); kernel 2 is at
    # the HBM roofline otherwise.
    return out.reshape(B, Cout, L, W)


# ---------------- pure-JAX reference (for correctness check) ----------------
def _conv1d_ref(x, w, b):
    # x: (B, Cin, L), w: (Cout, Cin, 3), b: (Cout,)
    y = jax.lax.conv_general_dilated(
        x, w, window_strides=(1,), padding=[(1, 1)],
        dimension_numbers=("NCH", "OIH", "NCH"))
    return y + b[None, :, None]


def bsft_ref(x, band, p):
    h = _conv1d_ref(band, p["Ws"], p["bs"])
    actv = h * jax.nn.sigmoid(h)
    gamma = _conv1d_ref(actv, p["Wg"], p["bg"])[..., None]   # (B, Cout, L, 1)
    beta = _conv1d_ref(actv, p["Wb"], p["bb"])[..., None]
    return x * (1.0 + gamma) + beta


if __name__ == "__main__":
    B, Cout, L, W, H = 2, 4, 16, 128, 32
    key = jax.random.PRNGKey(0)
    ks = jax.random.split(key, 8)

    x = jax.random.normal(ks[0], (B, Cout, L, W), jnp.float32)
    band = jax.random.normal(ks[1], (B, 2, L), jnp.float32)

    # deterministic parameter init (shapes from the module's __init__)
    params = {
        "Ws": jax.random.normal(ks[2], (H, 2, 3), jnp.float32) / jnp.sqrt(2.0 * 3.0),
        "bs": 0.1 * jax.random.normal(ks[3], (H,), jnp.float32),
        "Wg": jax.random.normal(ks[4], (Cout, H, 3), jnp.float32) * jnp.sqrt(2.0 / (H * 3)),
        "bg": 0.1 * jax.random.normal(ks[5], (Cout,), jnp.float32),
        "Wb": jax.random.normal(ks[6], (Cout, H, 3), jnp.float32) * jnp.sqrt(2.0 / (H * 3)),
        "bb": 0.1 * jax.random.normal(ks[7], (Cout,), jnp.float32),
    }

    out = jax.block_until_ready(bsft_forward(x, band, params))
    ref = jax.block_until_ready(bsft_ref(x, band, params))

    assert out.shape == (B, Cout, L, W), out.shape
    assert jnp.allclose(out, ref, atol=1e-4, rtol=1e-4), float(jnp.max(jnp.abs(out - ref)))
    print("KERNEL_OK")
</pallas_src>

<mosaic_0001>
module attributes {stable_mosaic.version = 11 : i64} {
  func.func @_film_params_kernel(%arg0: i32, %arg1: memref<32x6xf32, #tpu.memory_space<vmem>>, %arg2: memref<6x32xf32, #tpu.memory_space<vmem>>, %arg3: memref<1x32xf32, #tpu.memory_space<vmem>>, %arg4: memref<96x8xf32, #tpu.memory_space<vmem>>, %arg5: memref<1x8xf32, #tpu.memory_space<vmem>>, %arg6: memref<32x8xf32, #tpu.memory_space<vmem>>) attributes {dimension_semantics = [#tpu.dimension_semantics<arbitrary>], iteration_bounds = array<i64: 1>, scalar_prefetch = 0 : i64, scratch_operands = 0 : i64, tpu.core_type = #tpu.core_type<tc>, window_params = [{pipeline_mode = #tpu.pipeline_mode<synchronous>, transform_indices = @transform_0, window_bounds = array<i64: 32, 6>}, {pipeline_mode = #tpu.pipeline_mode<synchronous>, transform_indices = @transform_1, window_bounds = array<i64: 6, 32>}, {pipeline_mode = #tpu.pipeline_mode<synchronous>, transform_indices = @transform_2, window_bounds = array<i64: 1, 32>}, {pipeline_mode = #tpu.pipeline_mode<synchronous>, transform_indices = @transform_3, window_bounds = array<i64: 96, 8>}, {pipeline_mode = #tpu.pipeline_mode<synchronous>, transform_indices = @transform_4, window_bounds = array<i64: 1, 8>}, {pipeline_mode = #tpu.pipeline_mode<synchronous>, transform_indices = @transform_5, window_bounds = array<i64: 32, 8>}]} {
    %c0 = arith.constant 0 : index
    %c0_0 = arith.constant 0 : index
    %0 = vector.load %arg1[%c0, %c0_0] : memref<32x6xf32, #tpu.memory_space<vmem>>, vector<32x6xf32>
    %c0_1 = arith.constant 0 : index
    %c0_2 = arith.constant 0 : index
    %1 = vector.load %arg2[%c0_1, %c0_2] : memref<6x32xf32, #tpu.memory_space<vmem>>, vector<6x32xf32>
    %cst = arith.constant dense<0.000000e+00> : vector<32x32xf32>
    %2 = tpu.matmul %0, %1, %cst {dimension_numbers = #tpu.dot_dimension_numbers<[1], [0], [0], [1], [0, 0, 1, 1], [], []>} : vector<32x6xf32>, vector<6x32xf32>, vector<32x32xf32> -> vector<32x32xf32>
    %c0_3 = arith.constant 0 : index
    %c0_4 = arith.constant 0 : index
    %3 = vector.load %arg3[%c0_3, %c0_4] : memref<1x32xf32, #tpu.memory_space<vmem>>, vector<1x32xf32>
    %4 = vector.broadcast %3 : vector<1x32xf32> to vector<32x32xf32>
    %5 = arith.addf %2, %4 : vector<32x32xf32>
    %6 = arith.negf %5 : vector<32x32xf32>
    %7 = math.exp %6 : vector<32x32xf32>
    %cst_5 = arith.constant 1.000000e+00 : f32
    %8 = vector.broadcast %cst_5 : f32 to vector<32x32xf32>
    %9 = arith.addf %8, %7 : vector<32x32xf32>
    %10 = arith.divf %8, %9 : vector<32x32xf32>
    %11 = arith.mulf %5, %10 : vector<32x32xf32>
    %12 = tpu.iota {dimensions = array<i32: 0>} : vector<32x1xi32>
    %c16_i32 = arith.constant 16 : i32
    %c0_i32 = arith.constant 0 : i32
    %13 = arith.cmpi eq, %c16_i32, %c0_i32 : i32
    %c1_i32 = arith.constant 1 : i32
    %14 = arith.select %13, %c1_i32, %c16_i32 : i32
    %15 = vector.broadcast %14 : i32 to vector<32x1xi32>
    %16 = arith.remsi %12, %15 : vector<32x1xi32>
    %c0_i32_6 = arith.constant 0 : i32
    %17 = vector.broadcast %c0_i32_6 : i32 to vector<32x1xi32>
    %18 = arith.cmpi ne, %16, %17 : vector<32x1xi32>
    %c0_i32_7 = arith.constant 0 : i32
    %19 = vector.broadcast %c0_i32_7 : i32 to vector<32x1xi32>
    %20 = arith.cmpi slt, %16, %19 : vector<32x1xi32>
    %c0_i32_8 = arith.constant 0 : i32
    %21 = arith.cmpi slt, %14, %c0_i32_8 : i32
    %22 = vector.broadcast %21 : i1 to vector<32x1xi1>
    %23 = vector.broadcast %22 : vector<32x1xi1> to vector<32x1xi1>
    %24 = arith.xori %20, %23 : vector<32x1xi1>
    %25 = arith.andi %24, %18 : vector<32x1xi1>
    %26 = vector.broadcast %14 : i32 to vector<32x1xi32>
    %27 = arith.addi %16, %26 : vector<32x1xi32>
    %28 = arith.select %25, %27, %16 : vector<32x1xi1>, vector<32x1xi32>
    %c0_i32_9 = arith.constant 0 : i32
    %29 = vector.broadcast %c0_i32_9 : i32 to vector<32x1xi32>
    %30 = arith.cmpi eq, %28, %29 : vector<32x1xi32>
    %c1_i32_10 = arith.constant 1 : i32
    %31 = tpu.dynamic_rotate %11 by %c1_i32_10 dim 0 : vector<32x32xf32>, i32 -> vector<32x32xf32>
    %cst_11 = arith.constant 0.000000e+00 : f32
    %32 = vector.shape_cast %30 : vector<32x1xi1> to vector<32x1xi1>
    %33 = vector.broadcast %32 : vector<32x1xi1> to vector<32x32xi1>
    %34 = vector.broadcast %cst_11 : f32 to vector<32x32xf32>
    %35 = arith.select %33, %34, %31 : vector<32x32xi1>, vector<32x32xf32>
    %c15_i32 = arith.constant 15 : i32
    %36 = vector.broadcast %c15_i32 : i32 to vector<32x1xi32>
    %37 = arith.cmpi eq, %28, %36 : vector<32x1xi32>
    %c31_i32 = arith.constant 31 : i32
    %38 = tpu.dynamic_rotate %11 by %c31_i32 dim 0 : vector<32x32xf32>, i32 -> vector<32x32xf32>
    %cst_12 = arith.constant 0.000000e+00 : f32
    %39 = vector.shape_cast %37 : vector<32x1xi1> to vector<32x1xi1>
    %40 = vector.broadcast %39 : vector<32x1xi1> to vector<32x32xi1>
    %41 = vector.broadcast %cst_12 : f32 to vector<32x32xf32>
    %42 = arith.select %40, %41, %38 : vector<32x32xi1>, vector<32x32xf32>
    %43 = tpu.concatenate %35, %11, %42 in 1 : vector<32x32xf32>, vector<32x32xf32>, vector<32x32xf32> -> vector<32x96xf32>
    %c0_13 = arith.constant 0 : index
    %c0_14 = arith.constant 0 : index
    %44 = vector.load %arg4[%c0_13, %c0_14] : memref<96x8xf32, #tpu.memory_space<vmem>>, vector<96x8xf32>
    %cst_15 = arith.constant dense<0.000000e+00> : vector<32x8xf32>
    %45 = tpu.matmul %43, %44, %cst_15 {dimension_numbers = #tpu.dot_dimension_numbers<[1], [0], [0], [1], [0, 0, 1, 1], [], []>} : vector<32x96xf32>, vector<96x8xf32>, vector<32x8xf32> -> vector<32x8xf32>
    %c0_16 = arith.constant 0 : index
    %c0_17 = arith.constant 0 : index
    %46 = vector.load %arg5[%c0_16, %c0_17] : memref<1x8xf32, #tpu.memory_space<vmem>>, vector<1x8xf32>
    %47 = vector.broadcast %46 : vector<1x8xf32> to vector<32x8xf32>
    %48 = arith.addf %45, %47 : vector<32x8xf32>
    %c0_18 = arith.constant 0 : index
    %c0_19 = arith.constant 0 : index
    %49 = vector.load %arg6[%c0_18, %c0_19] : memref<32x8xf32, #tpu.memory_space<vmem>>, vector<32x8xf32>
    tpu.vector_store %arg6[%c0_18, %c0_19], %48 {strides = array<i32>} : memref<32x8xf32, #tpu.memory_space<vmem>>, vector<32x8xf32>,
    return
  }
  func.func @transform_0(%arg0: i32) -> (i32, i32) {
    %c0_i32 = arith.constant 0 : i32
    %c0_i32_0 = arith.constant 0 : i32
    %c0_i32_1 = arith.constant 0 : i32
    return %c0_i32, %c0_i32_0 : i32, i32
  }
  func.func @transform_1(%arg0: i32) -> (i32, i32) {
    %c0_i32 = arith.constant 0 : i32
    %c0_i32_0 = arith.constant 0 : i32
    %c0_i32_1 = arith.constant 0 : i32
    return %c0_i32, %c0_i32_0 : i32, i32
  }
  func.func @transform_2(%arg0: i32) -> (i32, i32) {
    %c0_i32 = arith.constant 0 : i32
    %c0_i32_0 = arith.constant 0 : i32
    %c0_i32_1 = arith.constant 0 : i32
    return %c0_i32, %c0_i32_0 : i32, i32
  }
  func.func @transform_3(%arg0: i32) -> (i32, i32) {
    %c0_i32 = arith.constant 0 : i32
    %c0_i32_0 = arith.constant 0 : i32
    %c0_i32_1 = arith.constant 0 : i32
    return %c0_i32, %c0_i32_0 : i32, i32
  }
  func.func @transform_4(%arg0: i32) -> (i32, i32) {
    %c0_i32 = arith.constant 0 : i32
    %c0_i32_0 = arith.constant 0 : i32
    %c0_i32_1 = arith.constant 0 : i32
    return %c0_i32, %c0_i32_0 : i32, i32
  }
  func.func @transform_5(%arg0: i32) -> (i32, i32) {
    %c0_i32 = arith.constant 0 : i32
    %c0_i32_0 = arith.constant 0 : i32
    %c0_i32_1 = arith.constant 0 : i32
    return %c0_i32, %c0_i32_0 : i32, i32
  }
}

</mosaic_0001>

<bundles_post_ra>
// kernel: tpu_custom_call.1
= control target key start
LH: loop header
LB: loop body
LE: loop exit
PB: predicated region body
PF: predicated region fallthrough
CT: control target
= control target key end

     0   :  { %vm45_vm0 = vcmask 1045504   ;;  %vm32_vm1 = vcmask 48128   ;;  %v162_v38 = vlaneseq  ;;  %s561_s26 = smov 32   ;;  %vm297_vm8 = vcmask 261120   ;;  %s694_s1 = inlined_call_operand.vmem [shape: f32[6,32], index: 1, kind: input, shape index: {}]   ;;  %s695_s0 = inlined_call_operand.vmem [shape: f32[32,6], index: 0, kind: input, shape index: {}]   ;;  %s696_s3 = inlined_call_operand.vmem [shape: f32[96,8], index: 3, kind: input, shape index: {}]   ;;  %s697_s2 = inlined_call_operand.vmem [shape: f32[1,32], index: 2, kind: input, shape index: {}]   ;;  %s698_s4 = inlined_call_operand.vmem [shape: f32[1,8], index: 4, kind: input, shape index: {}]   ;;  %s699_s5 = inlined_call_operand.vmem [shape: f32[32,8], index: 5, kind: output, shape index: {}]  }
   0x1   :  { %v24_v0 = vld [vmem:[%s694_s1] sm:$0x3f]  ;;  %v21_v2 = vld [vmem:[%s695_s0 + $0x8] sm:$0xff]  ;;  %v22_v3 = vld [vmem:[%s695_s0 + $0x10] sm:$0xff]  ;;  %vm302_vm9 = vcmask 523264   ;;  %vm326_vm10 = vcmask 785408  }
   0x2   :  { %v20_v1 = vld [vmem:[%s695_s0] sm:$0xff]  ;;  %469 = vmatprep.subr.msk.mxu0 %vm45_vm0, %v24_v0  ;;  %v23_v4 = vld [vmem:[%s695_s0 + $0x18] sm:$0xff]  ;;  %v308_v6 = vld [vmem:[%s696_s3 + $0x8] sm:$0xff]  ;;  %v163_v42 = vshrl.u32 %v162_v38, 7  ;;  %vm424_vm11 = vcmask 64512  }
   0x3   :  { %471 = vmatprep.mubr.msk.f32.mxu0 %vm32_vm1, %v20_v1  ;;  %470 = vmatpush3.msk.msra.mxu0 %vm45_vm0, %v24_v0  ;;  %v307_v5 = vld [vmem:[%s696_s3] sm:$0xff]  ;;  %v309_v7 = vld [vmem:[%s696_s3 + $0x10] sm:$0xff]  ;;  %v310_v9 = vld [vmem:[%s696_s3 + $0x18] sm:$0xff] }
   0x4   :  { %472 = vmatmul.mubr.msk.f32.vlgmr.msra.gmra.mrb[0].mxu0 %vm32_vm1, %v21_v2  ;;  %v507_v8 = vpack.c.bf16 %v308_v6, %v307_v5  ;;  %v511_v10 = vpack.c.bf16 %v310_v9, %v309_v7  ;;  %v311_v11 = vld [vmem:[%s696_s3 + $0x20] sm:$0xff]  ;;  %v312_v12 = vld [vmem:[%s696_s3 + $0x28] sm:$0xff]  ;;  %v313_v30 = vld [vmem:[%s696_s3 + $0x30] sm:$0xff]  ;;  %v165_v49 = vadd.s32 16, %v163_v42  ;;  %vm248_vm2 = vcmp.lt.s32.totalorder %v163_v42, 7 }
   0x5   :  { %474 = vmatprep.mubr.msk.f32.mxu0 %vm32_vm1, %v22_v3  ;;  %v515_v13 = vpack.c.bf16 %v312_v12, %v311_v11  ;;  %v433_v14 = vld [vmem:[%s697_s2] ss:$0 sm:$0xff]  ;;  %v314_v31 = vld [vmem:[%s696_s3 + $0x38] sm:$0xff]  ;;  %v316_v40 = vld [vmem:[%s696_s3 + $0x48] sm:$0xff]  ;;  %v166_v51 = vadd.s32 24, %v163_v42  ;;  %vm223_vm3 = vcmp.lt.s32.totalorder %v163_v42, 1 }
   0x6   :  { %531 = vmatprep.subr.bf16.mxu1 %v507_v8  ;;  %508 = vmatprep.subr.bf16.mxu0 %v507_v8  ;;  %v519_v33 = vpack.c.bf16 %v314_v31, %v313_v30  ;;  %v315_v39 = vld [vmem:[%s696_s3 + $0x40] sm:$0xff]  ;;  %v317_v43 = vld [vmem:[%s696_s3 + $0x50] sm:$0xff]  ;;  %v318_v44 = vld [vmem:[%s696_s3 + $0x58] sm:$0xff]  ;;  %v171_v54 = vand.u32 15, %v163_v42  ;;  %v164_v58 = vadd.s32 8, %v163_v42  ;;  %v185_v61 = vand.u32 15, %v165_v49 }
   0x7   :  { %537 = vmatpush3.bf16.msra.mxu1 %v507_v8  ;;  %510 = vmatpush3.bf16.msra.mxu0 %v507_v8  ;;  %v523_v41 = vpack.c.bf16 %v316_v40, %v315_v39  ;;  %v527_v45 = vpack.c.bf16 %v318_v44, %v317_v43  ;;  %v192_v3 = vand.u32 15, %v166_v51  ;;  %s562_s3 = smov 64  }
   0x8   :  { %475 = vmatmul.mubr.msk.f32.gmra.mrb[2].mxu0 %vm32_vm1, %v23_v4  ;;  %532 = vmatprep.subr.bf16.mxu1 %v511_v10  ;;  %vm652_vm4 = vcmp.eq.s32.totalorder %v171_v54, 0  ;;  %v178_v7 = vand.u32 15, %v164_v58  ;;  %vm658_vm5 = vcmp.eq.s32.totalorder %v185_v61, 0 }
   0x9   :  { %512 = vmatprep.subr.bf16.mxu0 %v511_v10  ;;  %vm243_vm6 = vcmp.eq.s32.totalorder %v192_v3, 15 }
   0xa   :  { %vm241_vm7 = vcmp.eq.s32.totalorder %v178_v7, 15 }
   0xb   :  { %538 = vmatpush3.bf16.msra.mxu1 %v511_v10  ;;  %514 = vmatpush3.bf16.msra.mxu0 %v511_v10 }
   0xc   :  { %533 = vmatprep.subr.bf16.mxu1 %v515_v13  ;;  %516 = vmatprep.subr.bf16.mxu0 %v515_v13 }
   0xf   :  { %539 = vmatpush3.bf16.msra.mxu1 %v515_v13  ;;  %518 = vmatpush3.bf16.msra.mxu0 %v515_v13 }
  0x10   :  { %534 = vmatprep.subr.bf16.mxu1 %v519_v33  ;;  %520 = vmatprep.subr.bf16.mxu0 %v519_v33 }
  0x13   :  { %540 = vmatpush3.bf16.msra.mxu1 %v519_v33  ;;  %522 = vmatpush3.bf16.msra.mxu0 %v519_v33 }
  0x14   :  { %535 = vmatprep.subr.bf16.mxu1 %v523_v41  ;;  %524 = vmatprep.subr.bf16.mxu0 %v523_v41 }
  0x17   :  { %541 = vmatpush3.bf16.msra.mxu1 %v523_v41  ;;  %526 = vmatpush3.bf16.msra.mxu0 %v523_v41 }
  0x18   :  { %536 = vmatprep.subr.bf16.mxu1 %v527_v45  ;;  %528 = vmatprep.subr.bf16.mxu0 %v527_v45 }
  0x1b   :  { %542 = vmatpush3.bf16.msra.mxu1 %v527_v45  ;;  %530 = vmatpush3.bf16.msra.mxu0 %v527_v45 }
  0xd7   :  { %v473_v15 = vpop.f32.mrb[0].mxu0 }
  0xd8   :  { %v121_v16 = vadd.f32 %v473_v15, %v433_v14  ;;  %v115_v17 = vpop.f32.mrb[1].mxu0 }
  0xd9   :  { %v116_v18 = vadd.f32 %v433_v14, %v115_v17 }
  0xda   :  { %v440_v19 = vmul.f32 -1.442695, %v121_v16 }
  0xdb   :  { %v439_v20 = vmul.f32 -1.442695, %v116_v18  ;;  %v476_v21 = vpop.f32.mrb[2].mxu0 }
  0xdc   :  { %545 = vpow2.f32 %v440_v19  ;;  %v131_v22 = vadd.f32 %v476_v21, %v433_v14  ;;  %v125_v23 = vpop.f32.mrb[3].mxu0 }
  0xdd   :  { %547 = vpow2.f32 %v439_v20  ;;  %v126_v24 = vadd.f32 %v433_v14, %v125_v23 }
  0xde   :  { %v442_v25 = vmul.f32 -1.442695, %v131_v22 }
  0xdf   :  { %v441_v26 = vmul.f32 -1.442695, %v126_v24 }
  0xe0   :  { %549 = vpow2.f32 %v442_v25 }
  0xe1   :  { %551 = vpow2.f32 %v441_v26 }
  0xe6   :  { %v546_v27 = vpop.eup %545 }
  0xe7   :  { %v548_v28 = vpop.eup %547  ;;  %v147_v29 = vadd.f32 1.0, %v546_v27 }
  0xe8   :  { %v146_v32 = vadd.f32 1.0, %v548_v28 }
  0xe9   :  { %553 = vrcp.f32 %v147_v29 }
  0xea   :  { %v550_v34 = vpop.eup %549  ;;  %555 = vrcp.f32 %v146_v32 }
  0xeb   :  { %v552_v35 = vpop.eup %551  ;;  %v149_v36 = vadd.f32 1.0, %v550_v34 }
  0xec   :  { %v148_v37 = vadd.f32 1.0, %v552_v35  ;;  %v443_v35 = vld [vmem:[%s698_s4] ss:$0 sm:$0xff] }
  0xed   :  { %557 = vrcp.f32 %v149_v36 }
  0xee   :  { %559 = vrcp.f32 %v148_v37 }
  0xf3   :  { %v554_v46 = vpop.eup %553 }
  0xf4   :  { %v556_v47 = vpop.eup %555  ;;  %v159_v48 = vmul.f32 %v554_v46, %v121_v16 }
  0xf5   :  { %v158_v50 = vmul.f32 %v556_v47, %v116_v18 }
  0xf6   :  { %v220_v52 = vrot.slane %v159_v48, 7  ;;  %271 = vrot.lane.b32.xlu1 %v159_v48, %s561_s26  ;;  %v245_v53 = vrot.slane %v159_v48, 1 }
  0xf7   :  { %v558_v55 = vpop.eup %557  ;;  %v219_v56 = vrot.slane %v158_v50, 7  ;;  %269 = vrot.lane.b32.xlu0 %v158_v50, %s561_s26  ;;  %v244_v57 = vrot.slane %v158_v50, 1 }
  0xf8   :  { %v560_v59 = vpop.eup %559  ;;  %v161_v60 = vmul.f32 %v558_v55, %v131_v22 }
  0xf9   :  { %v160_v62 = vmul.f32 %v560_v59, %v126_v24  ;;  %v251_v63 = vsel %vm248_vm2, %v244_v57, %v245_v53  ;;  %v226_v0 = vsel %vm223_vm3, %v219_v56, %v220_v52 }
  0xfa   :  { %v222_v1 = vrot.slane %v161_v60, 7  ;;  %275 = vrot.lane.b32.xlu1 %v161_v60, %s561_s26  ;;  %v247_v2 = vrot.slane %v161_v60, 1 }
  0xfb   :  { %v221_v5 = vrot.slane %v160_v62, 7  ;;  %285 = vrot.lane.b32.xlu0 %v251_v63, %s562_s3  ;;  %v246_v6 = vrot.slane %v160_v62, 1 }
  0xfc   :  { %v252_v8 = vsel %vm248_vm2, %v247_v2, %v244_v57  ;;  %v227_v9 = vsel %vm223_vm3, %v222_v1, %v219_v56 }
  0xfd   :  { %v249_v11 = vsel %vm248_vm2, %v246_v6, %v247_v2  ;;  %v250_v12 = vsel %vm248_vm2, %v245_v53, %v246_v6  ;;  %v236_v13 = vsel %vm652_vm4, 0.0, %v227_v9  ;;  %v224_v14 = vsel %vm223_vm3, %v221_v5, %v222_v1 }
  0xfe   :  { %289 = vrot.lane.b32.xlu1 %v249_v11, %s562_s3  ;;  %v225_v15 = vsel %vm223_vm3, %v220_v52, %v221_v5  ;;  %v264_v17 = vsel %vm243_vm6, 0.0, %v252_v8  ;;  %v262_v18 = vsel %vm241_vm7, 0.0, %v250_v12 }
  0xff   :  { %273 = vrot.lane.b32.xlu0 %v160_v62, %s561_s26  ;;  %v238_v16 = vsel %vm658_vm5, 0.0, %v225_v15 }
 0x102   :  { %291 = vrot.lane.b32.xlu1 %v264_v17, %s562_s3 }
 0x103   :  { %287 = vrot.lane.b32.xlu0 %v262_v18, %s562_s3 }
 0x168   :  { %v272_v19 = vpop.permute.xlu1 %271 }
 0x169   :  { %v270_v20 = vpop.permute.xlu0 %269  ;;  %v299_v31 = vsel %vm297_vm8, %v226_v0, %v272_v19 }
 0x16a   :  { %v298_v22 = vsel %vm297_vm8, %v236_v13, %v270_v20 }
 0x16c   :  { %v276_v21 = vpop.permute.xlu1 %275 }
 0x16d   :  { %v286_v23 = vpop.permute.xlu0 %285  ;;  %v301_v29 = vsel %vm297_vm8, %v224_v14, %v276_v21 }
 0x16e   :  { %v303_v24 = vsel %vm302_vm9, %v298_v22, %v286_v23 }
 0x16f   :  { %501 = vmatprep.mubr.msk.f32.mxu0 %vm326_vm10, %v303_v24 }
 0x170   :  { %v290_v25 = vpop.permute.xlu1 %289 }
 0x171   :  { %v274_v26 = vpop.permute.xlu0 %273 }
 0x172   :  { %v300_v27 = vsel %vm297_vm8, %v238_v16, %v274_v26 }
 0x173   :  { %v305_v28 = vsel %vm302_vm9, %v300_v27, %v290_v25 }
 0x174   :  { %v292_v30 = vpop.permute.xlu1 %291  ;;  %504 = vmatprep.mubr.msk.f32.mxu1 %vm326_vm10, %v305_v28 }
 0x175   :  { %v306_v32 = vsel %vm302_vm9, %v301_v29, %v292_v30  ;;  %v288_v33 = vpop.permute.xlu0 %287 }
 0x176   :  { %v304_v34 = vsel %vm302_vm9, %v299_v31, %v288_v33  ;;  %505 = vmatmul.mubr.msk.f32.vlgmr.msra.gmra.mrb[0].mxu1 %vm326_vm10, %v306_v32 }
 0x177   :  { %502 = vmatmul.mubr.msk.f32.vlgmr.msra.gmra.mrb[4].mxu0 %vm326_vm10, %v304_v34 }
 0x249   :  { %v506_v36 = vpop.f32.mrb[0].mxu1 }
 0x24a   :  { %v421_v37 = vadd.f32 %v506_v36, %v443_v35  ;;  %v503_v38 = vpop.f32.mrb[4].mxu0  ;;  %v415_v39 = vpop.f32.mrb[1].mxu1 }
 0x24b   :  { %v411_v40 = vadd.f32 %v503_v38, %v443_v35  ;;  %v416_v41 = vadd.f32 %v443_v35, %v415_v39  ;;  %v405_v42 = vpop.f32.mrb[5].mxu0 }
 0x24c   :  { %428 = vst.msk [vmem:[%s699_s5 + $0x18] sm:$0xff] %vm424_vm11, %v421_v37  ;;  %v406_v43 = vadd.f32 %v443_v35, %v405_v42 }
 0x24d   :  { %426 = vst.msk [vmem:[%s699_s5 + $0x8] sm:$0xff] %vm424_vm11, %v411_v40  ;;  %427 = vst.msk [vmem:[%s699_s5 + $0x10] sm:$0xff] %vm424_vm11, %v416_v41 }
 0x24e   :  { %425 = vst.msk [vmem:[%s699_s5] sm:$0xff] %vm424_vm11, %v406_v43 }

</bundles_post_ra>
